<compile_context>
chip_gen: v7x
topology: tpu7x:2x2x1
jax: 0.10.0
libtpu: 0.0.40
codegen_flags: <defaults>
</compile_context>

<pallas_src>
import jax
import jax.numpy as jnp
from jax.experimental import pallas as pl
from jax.experimental.pallas import tpu as pltpu


# ----------------------------- Pallas kernel --------------------------------

def _neighbor_integration_kernel(
    concept_ref,    # [G, D]      concept row per (b, c)
    stu_ref,        # [G, D]      student row repeated per concept
    neighbor_ref,   # [G, N, D]   neighbor rows per (b, c)
    wa_ref,         # [D, D]      concept/neighbor half of the Linear(2D->D) weight
    wb_ref,         # [D, D]      student half of the Linear(2D->D) weight
    b_ref,          # [1, D]      Linear bias
    out_ref,        # [G, D]
):
    f32 = jnp.float32
    concept = concept_ref[...]
    stu = stu_ref[...]
    nbr = neighbor_ref[...]
    n_nbr = float(nbr.shape[1])

    # `index = sum(x, -1, keepdim); index[index != 0] = 1`
    idx_o = (jnp.sum(concept, axis=-1, keepdims=True) != 0).astype(f32)    # [G, 1]
    idx_n = (jnp.sum(nbr, axis=-1, keepdims=True) != 0).astype(f32)        # [G, N, 1]

    # Fold mask + neighbor-axis sum through the affine layer (linearity).
    nb_sum = jnp.sum(idx_n * nbr, axis=1)                                  # [G, D]
    k = jnp.sum(idx_n, axis=1)                                             # [G, 1]

    # Linear(cat(a, stu)) = a @ Wa + stu @ Wb + b
    s_part = jnp.dot(stu, wb_ref[...], preferred_element_type=f32) + b_ref[...]   # [G, D]

    # origin branch is constant over the neighbor axis -> sum is N * (masked linear);
    # weights_softmax == 1 (softmax over size-1 dim), so that branch drops out.
    lhs = (n_nbr * idx_o) * concept + nb_sum                                       # [G, D]
    a_part = jnp.dot(lhs, wa_ref[...], preferred_element_type=f32)                 # [G, D]

    out_ref[...] = 0.5 * (a_part + (n_nbr * idx_o + k) * s_part)


def _pick_row_tile(n_rows, n_neighbors, d):
    """(b,c)-rows per grid step; keep double-buffered tiles within a few MiB of VMEM
    so the same tiling is safe on v5e/v6e (128 MiB) and v7x (64 MiB physical)."""
    itemsize = 4
    vmem_budget = 8 * 1024 * 1024
    bytes_per_row = 2 * itemsize * (n_neighbors * d + 3 * d)   # x2 for double buffering
    tile = vmem_budget // max(bytes_per_row, 1)
    if tile >= n_rows:
        return n_rows
    return max(8, (tile // 8) * 8)


def neighbor_integration_forward(stu_emb, concept_emb, neighbor_emb, w_full, bias):
    """stu_emb [B,D], concept_emb [B,C,D], neighbor_emb [B,C,N,D] (module needs N==C),
    w_full [2D,D] (Linear(2D->D) weight stored transposed), bias [D]. Returns [B,C,D]."""
    B, D = stu_emb.shape
    C = concept_emb.shape[1]
    N = neighbor_emb.shape[2]
    R = B * C

    wa = w_full[:D, :]          # applied to the concept / neighbor half of the cat
    wb = w_full[D:, :]          # applied to the student half of the cat
    b2 = bias.reshape(1, D)

    # Wrapper-side layout plumbing: flatten (B, C) -> rows, lane dim = D.
    concept_f = concept_emb.reshape(R, D)
    neighbor_f = neighbor_emb.reshape(R, N, D)
    stu_rep = jnp.broadcast_to(stu_emb[:, None, :], (B, C, D)).reshape(R, D)

    G = _pick_row_tile(R, N, D)
    grid = (pl.cdiv(R, G),)

    out = pl.pallas_call(
        _neighbor_integration_kernel,
        out_shape=jax.ShapeDtypeStruct((R, D), jnp.float32),
        grid=grid,
        in_specs=[
            pl.BlockSpec((G, D), lambda i: (i, 0)),         # concept rows
            pl.BlockSpec((G, D), lambda i: (i, 0)),         # student rows
            pl.BlockSpec((G, N, D), lambda i: (i, 0, 0)),   # neighbor rows
            pl.BlockSpec((D, D), lambda i: (0, 0)),         # Wa  (constant -> VMEM-resident)
            pl.BlockSpec((D, D), lambda i: (0, 0)),         # Wb  (constant -> VMEM-resident)
            pl.BlockSpec((1, D), lambda i: (0, 0)),         # bias
        ],
        out_specs=pl.BlockSpec((G, D), lambda i: (i, 0)),
        compiler_params=pltpu.CompilerParams(dimension_semantics=("parallel",)),
    )(concept_f, stu_rep, neighbor_f, wa, wb, b2)

    return out.reshape(B, C, D)


# ----------------------------- reference & setup ------------------------------

def xavier_normal(key, fan_in, fan_out):
    std = (2.0 / (fan_in + fan_out)) ** 0.5
    # stored as [in, out] (transposed vs PyTorch's [out, in]) so y = x @ W
    return jax.random.normal(key, (fan_in, fan_out), dtype=jnp.float32) * std


def jax_reference(stu_emb, concept_emb, neighbor_emb, w_s, b_s, w_w, b_w):
    """Literal translation of the PyTorch forward (including the weight branch)."""
    B, D = stu_emb.shape
    C = concept_emb.shape[1]
    N = neighbor_emb.shape[2]
    concept_ext = jnp.broadcast_to(concept_emb[:, :, None, :], (B, C, N, D))
    stu_ext = jnp.broadcast_to(stu_emb[:, None, None, :], (B, C, C, D))  # needs N == C

    def concept_integration(concept, target, w, b):
        index = jnp.sum(concept, -1, keepdims=True)
        index = jnp.where(index != 0, 1.0, index)
        x = jnp.concatenate([concept, target], -1)
        x = x @ w + b
        return x * index

    weights = concept_integration(concept_ext, neighbor_emb, w_w, b_w)     # [B,C,N,1]
    weights_softmax = jax.nn.softmax(weights, axis=-1)                     # == 1
    nint = concept_integration(neighbor_emb, stu_ext, w_s, b_s)            # [B,C,N,D]
    oint = concept_integration(concept_ext, stu_ext, w_s, b_s)             # [B,C,N,D]
    y = jnp.sum(oint + weights_softmax * nint, axis=-2)
    return y / 2.0


# ----------------------------------- main ------------------------------------

if __name__ == "__main__":
    B, C, D = 2, 8, 32
    N = C  # the module's repeat pattern requires n_neighbors == n_concepts

    key = jax.random.PRNGKey(0)
    k1, k2, k3, k4, k5 = jax.random.split(key, 5)

    stu_emb = jax.random.normal(k1, (B, D), dtype=jnp.float32)
    concept_emb = jax.random.normal(k2, (B, C, D), dtype=jnp.float32)
    neighbor_emb = jax.random.normal(k3, (B, C, N, D), dtype=jnp.float32)
    # zero some rows so the `index[index != 0] = 1` masking path is exercised
    concept_emb = concept_emb.at[0, 3].set(0.0)
    neighbor_emb = neighbor_emb.at[0, 1, 2].set(0.0)
    neighbor_emb = neighbor_emb.at[1, 5, 0].set(0.0)

    # stu_concept_integration: Linear(2D -> D), xavier_normal weight, bias filled 0.1
    w_s = xavier_normal(k4, 2 * D, D)
    b_s = jnp.full((D,), 0.1, dtype=jnp.float32)
    # concept_neighbor_weight: Linear(2D -> 1) (output-irrelevant; used only in reference)
    w_w = xavier_normal(k5, 2 * D, 1)
    b_w = jnp.full((1,), 0.1, dtype=jnp.float32)

    out = neighbor_integration_forward(stu_emb, concept_emb, neighbor_emb, w_s, b_s)
    out = jax.block_until_ready(out)

    ref = jax_reference(stu_emb, concept_emb, neighbor_emb, w_s, b_s, w_w, b_w)
    assert out.shape == (B, C, D)
    assert jnp.allclose(out, ref, atol=1e-4, rtol=1e-4), "Pallas output mismatch vs JAX reference"

    print("KERNEL_OK")
</pallas_src>

<mosaic_0001>
module attributes {stable_mosaic.version = 11 : i64} {
  func.func @_neighbor_integration_kernel(%arg0: i32, %arg1: memref<16x32xf32, #tpu.memory_space<vmem>>, %arg2: memref<16x32xf32, #tpu.memory_space<vmem>>, %arg3: memref<16x8x32xf32, #tpu.memory_space<vmem>>, %arg4: memref<32x32xf32, #tpu.memory_space<vmem>>, %arg5: memref<32x32xf32, #tpu.memory_space<vmem>>, %arg6: memref<1x32xf32, #tpu.memory_space<vmem>>, %arg7: memref<16x32xf32, #tpu.memory_space<vmem>>) attributes {dimension_semantics = [#tpu.dimension_semantics<parallel>], iteration_bounds = array<i64: 1>, scalar_prefetch = 0 : i64, scratch_operands = 0 : i64, tpu.core_type = #tpu.core_type<tc>, window_params = [{transform_indices = @transform_0, window_bounds = array<i64: 16, 32>}, {transform_indices = @transform_1, window_bounds = array<i64: 16, 32>}, {transform_indices = @transform_2, window_bounds = array<i64: 16, 8, 32>}, {pipeline_mode = #tpu.pipeline_mode<synchronous>, transform_indices = @transform_3, window_bounds = array<i64: 32, 32>}, {pipeline_mode = #tpu.pipeline_mode<synchronous>, transform_indices = @transform_4, window_bounds = array<i64: 32, 32>}, {pipeline_mode = #tpu.pipeline_mode<synchronous>, transform_indices = @transform_5, window_bounds = array<i64: 1, 32>}, {transform_indices = @transform_6, window_bounds = array<i64: 16, 32>}]} {
    %c0 = arith.constant 0 : index
    %c0_0 = arith.constant 0 : index
    %0 = vector.load %arg1[%c0, %c0_0] : memref<16x32xf32, #tpu.memory_space<vmem>>, vector<16x32xf32>
    %c0_1 = arith.constant 0 : index
    %c0_2 = arith.constant 0 : index
    %1 = vector.load %arg2[%c0_1, %c0_2] : memref<16x32xf32, #tpu.memory_space<vmem>>, vector<16x32xf32>
    %c0_3 = arith.constant 0 : index
    %c0_4 = arith.constant 0 : index
    %c0_5 = arith.constant 0 : index
    %2 = vector.load %arg3[%c0_3, %c0_4, %c0_5] : memref<16x8x32xf32, #tpu.memory_space<vmem>>, vector<16x8x32xf32>
    %cst = arith.constant dense<0.000000e+00> : vector<16xf32>
    %3 = vector.multi_reduction <add>, %0, %cst [1] : vector<16x32xf32> to vector<16xf32>
    %4 = vector.shape_cast %3 : vector<16xf32> to vector<16x1xf32>
    %cst_6 = arith.constant 0.000000e+00 : f32
    %5 = vector.broadcast %cst_6 : f32 to vector<16x1xf32>
    %6 = arith.cmpf one, %4, %5 : vector<16x1xf32>
    %7 = arith.extui %6 : vector<16x1xi1> to vector<16x1xi32>
    %8 = arith.sitofp %7 : vector<16x1xi32> to vector<16x1xf32>
    %cst_7 = arith.constant dense<0.000000e+00> : vector<16x8xf32>
    %9 = vector.multi_reduction <add>, %2, %cst_7 [2] : vector<16x8x32xf32> to vector<16x8xf32>
    %10 = vector.shape_cast %9 : vector<16x8xf32> to vector<16x8x1xf32>
    %cst_8 = arith.constant 0.000000e+00 : f32
    %11 = vector.broadcast %cst_8 : f32 to vector<16x8x1xf32>
    %12 = arith.cmpf one, %10, %11 : vector<16x8x1xf32>
    %13 = arith.extui %12 : vector<16x8x1xi1> to vector<16x8x1xi32>
    %14 = arith.sitofp %13 : vector<16x8x1xi32> to vector<16x8x1xf32>
    %15 = vector.broadcast %14 : vector<16x8x1xf32> to vector<16x8x32xf32>
    %16 = arith.mulf %15, %2 : vector<16x8x32xf32>
    %cst_9 = arith.constant dense<0.000000e+00> : vector<16x32xf32>
    %17 = vector.multi_reduction <add>, %16, %cst_9 [1] : vector<16x8x32xf32> to vector<16x32xf32>
    %cst_10 = arith.constant dense<0.000000e+00> : vector<16x1xf32>
    %18 = vector.multi_reduction <add>, %14, %cst_10 [1] : vector<16x8x1xf32> to vector<16x1xf32>
    %c0_11 = arith.constant 0 : index
    %c0_12 = arith.constant 0 : index
    %19 = vector.load %arg5[%c0_11, %c0_12] : memref<32x32xf32, #tpu.memory_space<vmem>>, vector<32x32xf32>
    %cst_13 = arith.constant dense<0.000000e+00> : vector<16x32xf32>
    %20 = tpu.matmul %1, %19, %cst_13 {dimension_numbers = #tpu.dot_dimension_numbers<[1], [0], [0], [1], [0, 0, 1, 1], [], []>} : vector<16x32xf32>, vector<32x32xf32>, vector<16x32xf32> -> vector<16x32xf32>
    %c0_14 = arith.constant 0 : index
    %c0_15 = arith.constant 0 : index
    %21 = vector.load %arg6[%c0_14, %c0_15] : memref<1x32xf32, #tpu.memory_space<vmem>>, vector<1x32xf32>
    %22 = vector.broadcast %21 : vector<1x32xf32> to vector<16x32xf32>
    %23 = arith.addf %20, %22 : vector<16x32xf32>
    %cst_16 = arith.constant 8.000000e+00 : f32
    %24 = vector.broadcast %cst_16 : f32 to vector<16x1xf32>
    %25 = arith.mulf %24, %8 : vector<16x1xf32>
    %26 = vector.broadcast %25 : vector<16x1xf32> to vector<16x32xf32>
    %27 = arith.mulf %26, %0 : vector<16x32xf32>
    %28 = arith.addf %27, %17 : vector<16x32xf32>
    %c0_17 = arith.constant 0 : index
    %c0_18 = arith.constant 0 : index
    %29 = vector.load %arg4[%c0_17, %c0_18] : memref<32x32xf32, #tpu.memory_space<vmem>>, vector<32x32xf32>
    %cst_19 = arith.constant dense<0.000000e+00> : vector<16x32xf32>
    %30 = tpu.matmul %28, %29, %cst_19 {dimension_numbers = #tpu.dot_dimension_numbers<[1], [0], [0], [1], [0, 0, 1, 1], [], []>} : vector<16x32xf32>, vector<32x32xf32>, vector<16x32xf32> -> vector<16x32xf32>
    %cst_20 = arith.constant 8.000000e+00 : f32
    %31 = vector.broadcast %cst_20 : f32 to vector<16x1xf32>
    %32 = arith.mulf %31, %8 : vector<16x1xf32>
    %33 = arith.addf %32, %18 : vector<16x1xf32>
    %34 = vector.broadcast %33 : vector<16x1xf32> to vector<16x32xf32>
    %35 = arith.mulf %34, %23 : vector<16x32xf32>
    %36 = arith.addf %30, %35 : vector<16x32xf32>
    %cst_21 = arith.constant 5.000000e-01 : f32
    %37 = vector.broadcast %cst_21 : f32 to vector<16x32xf32>
    %38 = arith.mulf %37, %36 : vector<16x32xf32>
    %c0_22 = arith.constant 0 : index
    %c0_23 = arith.constant 0 : index
    %39 = vector.load %arg7[%c0_22, %c0_23] : memref<16x32xf32, #tpu.memory_space<vmem>>, vector<16x32xf32>
    tpu.vector_store %arg7[%c0_22, %c0_23], %38 {strides = array<i32>} : memref<16x32xf32, #tpu.memory_space<vmem>>, vector<16x32xf32>,
    return
  }
  func.func @transform_0(%arg0: i32) -> (i32, i32) {
    %c0_i32 = arith.constant 0 : i32
    %c0_i32_0 = arith.constant 0 : i32
    return %arg0, %c0_i32 : i32, i32
  }
  func.func @transform_1(%arg0: i32) -> (i32, i32) {
    %c0_i32 = arith.constant 0 : i32
    %c0_i32_0 = arith.constant 0 : i32
    return %arg0, %c0_i32 : i32, i32
  }
  func.func @transform_2(%arg0: i32) -> (i32, i32, i32) {
    %c0_i32 = arith.constant 0 : i32
    %c0_i32_0 = arith.constant 0 : i32
    %c0_i32_1 = arith.constant 0 : i32
    return %arg0, %c0_i32, %c0_i32_0 : i32, i32, i32
  }
  func.func @transform_3(%arg0: i32) -> (i32, i32) {
    %c0_i32 = arith.constant 0 : i32
    %c0_i32_0 = arith.constant 0 : i32
    %c0_i32_1 = arith.constant 0 : i32
    return %c0_i32, %c0_i32_0 : i32, i32
  }
  func.func @transform_4(%arg0: i32) -> (i32, i32) {
    %c0_i32 = arith.constant 0 : i32
    %c0_i32_0 = arith.constant 0 : i32
    %c0_i32_1 = arith.constant 0 : i32
    return %c0_i32, %c0_i32_0 : i32, i32
  }
  func.func @transform_5(%arg0: i32) -> (i32, i32) {
    %c0_i32 = arith.constant 0 : i32
    %c0_i32_0 = arith.constant 0 : i32
    %c0_i32_1 = arith.constant 0 : i32
    return %c0_i32, %c0_i32_0 : i32, i32
  }
  func.func @transform_6(%arg0: i32) -> (i32, i32) {
    %c0_i32 = arith.constant 0 : i32
    %c0_i32_0 = arith.constant 0 : i32
    return %arg0, %c0_i32 : i32, i32
  }
}

</mosaic_0001>

<bundles_post_ra>
// kernel: tpu_custom_call.1
= control target key start
LH: loop header
LB: loop body
LE: loop exit
PB: predicated region body
PF: predicated region fallthrough
CT: control target
= control target key end

     0   :  { %11 = vsyncpa [#allocation3], 0  ;;  %s1311_s0 = inlined_call_operand.hbm [shape: f32[16,32], index: 0, kind: input, shape index: {}]   ;;  %s1312_s1 = inlined_call_operand.hbm [shape: f32[16,32], index: 1, kind: input, shape index: {}]   ;;  %s1313_s2 = inlined_call_operand.hbm [shape: f32[16,8,32], index: 2, kind: input, shape index: {}]   ;;  %s1314_s3 = inlined_call_operand.hbm [shape: f32[32,32], index: 3, kind: input, shape index: {}]   ;;  %s1315_s4 = inlined_call_operand.hbm [shape: f32[32,32], index: 4, kind: input, shape index: {}]   ;;  %s1316_s5 = inlined_call_operand.vmem [shape: f32[1,32], index: 5, kind: input, shape index: {}]   ;;  %s1317_s6 = inlined_call_operand.hbm [shape: f32[16,32], index: 6, kind: output, shape index: {}]  }
   0x1   :  { %12 = vsyncpa [#allocation6], 0 }
   0x2   :  { %13 = vsyncpa [#allocation9], 0 }
   0x3   :  { %14 = vsyncpa [#allocation4], 0  ;;  %s961_s21 = smov [#allocation5]   ;;  %s962_s23 = smov [#allocation8]  }
   0x4   :  { %s32_s22 = sshll.u32 %s961_s21, 4  ;;  %s56_s24 = sshll.u32 %s962_s23, 4  ;;  %s33_s22 = int_to_ptr.vmem [resolvable:$true] %s32_s22  ;;  %s1006_s24 = int_to_ptr.vmem [resolvable:$true] %s56_s24 }
   0x5   :  { %s821_s27 = scalar_lea.hbm %s1312_s1, 256 }
   0x6   :  { %p822_p0 = scmp.ne.s32.totalorder %s1312_s1, %s821_s27  ;;  %p825_p1 = scmp.lt.u32.totalorder %s821_s27, %s1312_s1 }
   0x8   :  { %p827_p2 = pnand %p825_p1, %p822_p0 }
   0xa   :  { %830 = shalt.err (!%p827_p2)
}
   0xb   :  { %s831_s8 = scalar_lea.vmem %s33_s22, 256  ;;  %p836_p4 = scmp.lt.s32.totalorder %s33_s22, %s33_s22 }
   0xc   :  { %p832_p3 = scmp.ne.s32.totalorder %s33_s22, %s831_s8  ;;  %p837_p5 = scmp.lt.s32.totalorder %s831_s8, %s831_s8 }
   0xe   :  { %p838_p6 = por %p837_p5, %p836_p4 }
  0x10   :  { %p839_p7 = pnand %p838_p6, %p832_p3 }
  0x12   :  { %842 = shalt.err (!%p839_p7)
}
  0x13   :  { %s963_s9 = smov 128   ;;  %s964_s10 = smov 8  }
  0x14   :  { %38 = dma.hbm_to_vmem [thread:$0]  %s1312_s1, 256, %s33_s22, [#allocation6], %s963_s9, %s963_s9, %s964_s10  }
  0x15   :  { %s843_s15 = scalar_lea.hbm %s1314_s3, 512 }
  0x16   :  { %p844_p8 = scmp.ne.s32.totalorder %s1314_s3, %s843_s15  ;;  %p847_p9 = scmp.lt.u32.totalorder %s843_s15, %s1314_s3 }
  0x18   :  { %p849_p10 = pnand %p847_p9, %p844_p8 }
  0x1a   :  { %852 = shalt.err (!%p849_p10)
}
  0x1b   :  { %s853_s20 = scalar_lea.vmem %s1006_s24, 512  ;;  %p858_p12 = scmp.lt.s32.totalorder %s1006_s24, %s1006_s24 }
  0x1c   :  { %p854_p11 = scmp.ne.s32.totalorder %s1006_s24, %s853_s20  ;;  %p859_p13 = scmp.lt.s32.totalorder %s853_s20, %s853_s20 }
  0x1e   :  { %p860_p0 = por %p859_p13, %p858_p12 }
  0x20   :  { %p861_p1 = pnand %p860_p0, %p854_p11 }
  0x22   :  { %864 = shalt.err (!%p861_p1)
}
  0x23   :  { %62 = dma.hbm_to_vmem [thread:$0]  %s1314_s3, 512, %s1006_s24, [#allocation9], %s963_s9, %s963_s9, %s964_s10  }
  0x24   :  { %s965_s22 = smov [#allocation2]   ;;  %s966_s25 = smov [#allocation7]  }
  0x25   :  { %s20_s23 = sshll.u32 %s965_s22, 4  ;;  %s44_s26 = sshll.u32 %s966_s25, 4  ;;  %s21_s23 = int_to_ptr.vmem [resolvable:$true] %s20_s23  ;;  %s1043_s26 = int_to_ptr.vmem [resolvable:$true] %s44_s26 }
  0x26   :  { %s865_s29 = scalar_lea.hbm %s1311_s0, 256 }
  0x27   :  { %p866_p2 = scmp.ne.s32.totalorder %s1311_s0, %s865_s29  ;;  %p869_p3 = scmp.lt.u32.totalorder %s865_s29, %s1311_s0 }
  0x29   :  { %p871_p4 = pnand %p869_p3, %p866_p2 }
  0x2b   :  { %874 = shalt.err (!%p871_p4)
}
  0x2c   :  { %s875_s3 = scalar_lea.vmem %s21_s23, 256  ;;  %p880_p6 = scmp.lt.s32.totalorder %s21_s23, %s21_s23 }
  0x2d   :  { %p876_p5 = scmp.ne.s32.totalorder %s21_s23, %s875_s3  ;;  %p881_p7 = scmp.lt.s32.totalorder %s875_s3, %s875_s3 }
  0x2f   :  { %p882_p8 = por %p881_p7, %p880_p6 }
  0x31   :  { %p883_p9 = pnand %p882_p8, %p876_p5 }
  0x33   :  { %886 = shalt.err (!%p883_p9)
}
  0x34   :  { %26 = dma.hbm_to_vmem [thread:$0]  %s1311_s0, 256, %s21_s23, [#allocation3], %s963_s9, %s963_s9, %s964_s10  }
  0x35   :  { %s887_s15 = scalar_lea.hbm %s1313_s2, 2048 }
  0x36   :  { %p888_p10 = scmp.ne.s32.totalorder %s1313_s2, %s887_s15  ;;  %p891_p11 = scmp.lt.u32.totalorder %s887_s15, %s1313_s2 }
  0x38   :  { %p893_p12 = pnand %p891_p11, %p888_p10 }
  0x3a   :  { %896 = shalt.err (!%p893_p12)
}
  0x3b   :  { %s897_s20 = scalar_lea.vmem %s1043_s26, 2048  ;;  %p902_p0 = scmp.lt.s32.totalorder %s1043_s26, %s1043_s26 }
  0x3c   :  { %p898_p13 = scmp.ne.s32.totalorder %s1043_s26, %s897_s20  ;;  %p903_p1 = scmp.lt.s32.totalorder %s897_s20, %s897_s20 }
  0x3e   :  { %p904_p2 = por %p903_p1, %p902_p0 }
  0x40   :  { %p905_p3 = pnand %p904_p2, %p898_p13 }
  0x42   :  { %908 = shalt.err (!%p905_p3)
}
  0x43   :  { %50 = dma.hbm_to_vmem [thread:$0]  %s1313_s2, 2048, %s1043_s26, [#allocation6], %s963_s9, %s963_s9, %s964_s10  }
  0x44   :  { %s967_s21 = smov [#allocation10]   ;;  %s909_s27 = scalar_lea.hbm %s1315_s4, 512 }
  0x45   :  { %s68_s22 = sshll.u32 %s967_s21, 4  ;;  %p910_p4 = scmp.ne.s32.totalorder %s1315_s4, %s909_s27  ;;  %s69_s22 = int_to_ptr.vmem [resolvable:$true] %s68_s22 }
  0x46   :  { %p913_p5 = scmp.lt.u32.totalorder %s909_s27, %s1315_s4 }
  0x48   :  { %p915_p6 = pnand %p913_p5, %p910_p4 }
  0x4a   :  { %918 = shalt.err (!%p915_p6)
}
  0x4b   :  { %s919_s8 = scalar_lea.vmem %s69_s22, 512  ;;  %p924_p8 = scmp.lt.s32.totalorder %s69_s22, %s69_s22 }
  0x4c   :  { %p920_p7 = scmp.ne.s32.totalorder %s69_s22, %s919_s8  ;;  %p925_p9 = scmp.lt.s32.totalorder %s919_s8, %s919_s8 }
  0x4e   :  { %p926_p10 = por %p925_p9, %p924_p8 }
  0x50   :  { %p927_p11 = pnand %p926_p10, %p920_p7 }
  0x52   :  { %930 = shalt.err (!%p927_p11)
}
  0x53   :  { %74 = dma.hbm_to_vmem [thread:$0]  %s1315_s4, 512, %s69_s22, [#allocation9], %s963_s9, %s963_s9, %s964_s10  }
  0x54   :  { %953 = dma.done.wait [#allocation3], 256  }
  0x55   :  { %954 = vsyncadd [#allocation3], 4294967040 }
  0x56   :  { %955 = dma.done.wait [#allocation6], 2304  }
  0x57   :  { %956 = vsyncadd [#allocation6], 4294964992 }
  0x58   :  { %957 = dma.done.wait [#allocation9], 1024  }
  0x59   :  { %958 = vsyncadd [#allocation9], 4294966272  ;;  %vm112_vm0 = vcmask 261120   ;;  %v1095_v0 = vld [vmem:[#allocation7 + $0x10] sm:$0xff]  ;;  %v1097_v1 = vld [vmem:[#allocation7] sm:$0xff]  ;;  %v968_v47 = vmov 0  }
  0x5a   :  { %v1099_v2 = vld [vmem:[#allocation7 + $0x40] sm:$0xff]  ;;  %v131_v3 = vsel %vm112_vm0, %v1095_v0, 0.0  ;;  %v125_v4 = vsel %vm112_vm0, %v1097_v1, 0.0  ;;  %v1105_v5 = vld [vmem:[#allocation7 + $0x8] sm:$0xff]  ;;  %v1111_v8 = vld [vmem:[#allocation7 + $0x18] sm:$0xff]  ;;  %819 = vset.pattern.permute.xlu0 %v968_v47  ;;  %820 = vset.pattern.permute.xlu1 %v968_v47  ;;  %v969_v53 = vmov 0.0  }
  0x5b   :  { %132 = vadd.xlane.f32.xlu1 %v131_v3  ;;  %126 = vadd.xlane.f32.xlu0 %v125_v4  ;;  %v149_v6 = vsel %vm112_vm0, %v1099_v2, 0.0  ;;  %v128_v7 = vsel %vm112_vm0, %v1105_v5, 0.0  ;;  %v1113_v9 = vld [vmem:[#allocation7 + $0x48] sm:$0xff]  ;;  %v445_v10 = vld [vmem:[#allocation10] sm:$0xff]  ;;  %v447_v12 = vld [vmem:[#allocation10 + $0x10] sm:$0xff]  ;;  %v134_v13 = vsel %vm112_vm0, %v1111_v8, 0.0 }
  0x5c   :  { %v446_v11 = vld [vmem:[#allocation10 + $0x8] sm:$0xff]  ;;  %v152_v14 = vsel %vm112_vm0, %v1113_v9, 0.0  ;;  %v448_v16 = vld [vmem:[#allocation10 + $0x18] sm:$0xff]  ;;  %v94_v17 = vld [vmem:[#allocation5] sm:$0xff]  ;;  %vm557_vm5 = vcmask 1041409   ;;  %vm559_vm8 = vcmask 1042434  }
  0x5d   :  { %v793_v15 = vpack.c.bf16 %v446_v11, %v445_v10  ;;  %v1119_v18 = vld [vmem:[#allocation7 + $0x20] sm:$0xff]  ;;  %v1121_v19 = vld [vmem:[#allocation7 + $0x50] sm:$0xff]  ;;  %v797_v20 = vpack.c.bf16 %v448_v16, %v447_v12  ;;  %779 = vmatprep.mubr.msk.f32.mxu0 %vm112_vm0, %v94_v17  ;;  %v1128_v23 = vld [vmem:[#allocation7 + $0x28] sm:$0xff]  ;;  %vm561_vm10 = vcmask 1043459   ;;  %s970_s3 = smov [#allocation11]  }
  0x5e   :  { %v137_v21 = vsel %vm112_vm0, %v1119_v18, 0.0  ;;  %v155_v22 = vsel %vm112_vm0, %v1121_v19, 0.0  ;;  %v1130_v24 = vld [vmem:[#allocation7 + $0x58] sm:$0xff]  ;;  %v140_v25 = vsel %vm112_vm0, %v1128_v23, 0.0  ;;  %v1136_v27 = vld [vmem:[#allocation7 + $0x30] sm:$0xff]  ;;  %v1138_v28 = vld [vmem:[#allocation7 + $0x60] sm:$0xff] }
  0x5f   :  { %150 = vadd.xlane.f32.xlu1 %v149_v6  ;;  %129 = vadd.xlane.f32.xlu0 %v128_v7  ;;  %v158_v26 = vsel %vm112_vm0, %v1130_v24, 0.0  ;;  %v95_v29 = vld [vmem:[#allocation5 + $0x8] sm:$0xff]  ;;  %v143_v30 = vsel %vm112_vm0, %v1136_v27, 0.0  ;;  %v161_v31 = vsel %vm112_vm0, %v1138_v28, 0.0  ;;  %v1147_v33 = vld [vmem:[#allocation7 + $0x68] sm:$0xff]  ;;  %v1155_v37 = vld [vmem:[#allocation7 + $0x70] sm:$0xff] }
  0x60   :  { %794 = vmatprep.subr.bf16.mxu0 %v793_v15  ;;  %v1145_v32 = vld [vmem:[#allocation7 + $0x38] sm:$0xff]  ;;  %v164_v35 = vsel %vm112_vm0, %v1147_v33, 0.0  ;;  %v167_v39 = vsel %vm112_vm0, %v1155_v37, 0.0  ;;  %v1161_v40 = vld [vmem:[#allocation2] sm:$0xff]  ;;  %v1163_v41 = vld [vmem:[#allocation2 + $0x8] sm:$0xff]  ;;  %s722_s24 = sshll.u32 %s970_s3, 4  ;;  %s723_s24 = int_to_ptr.vmem [resolvable:$true] %s722_s24 }
  0x61   :  { %796 = vmatpush3.bf16.msra.mxu0 %v793_v15  ;;  %v146_v34 = vsel %vm112_vm0, %v1145_v32, 0.0  ;;  %v1153_v36 = vld [vmem:[#allocation7 + $0x78] sm:$0xff]  ;;  %v113_v42 = vsel %vm112_vm0, %v1161_v40, 0.0  ;;  %v116_v43 = vsel %vm112_vm0, %v1163_v41, 0.0  ;;  %v582_v44 = vld [vmem:[#allocation8] sm:$0xff]  ;;  %v583_v45 = vld [vmem:[#allocation8 + $0x8] sm:$0xff]  ;;  %p936_p13 = scmp.lt.s32.totalorder %s723_s24, %s723_s24 }
  0x62   :  { %798 = vmatprep.subr.bf16.mxu0 %v797_v20  ;;  %v170_v38 = vsel %vm112_vm0, %v1153_v36, 0.0  ;;  %v801_v46 = vpack.c.bf16 %v583_v45, %v582_v44  ;;  %v584_v48 = vld [vmem:[#allocation8 + $0x10] sm:$0xff]  ;;  %v585_v49 = vld [vmem:[#allocation8 + $0x18] sm:$0xff] }
  0x63   :  { %135 = vadd.xlane.f32.xlu1 %v134_v13  ;;  %153 = vadd.xlane.f32.xlu0 %v152_v14  ;;  %v805_v50 = vpack.c.bf16 %v585_v49, %v584_v48 }
  0x64   :  { %802 = vmatprep.subr.bf16.mxu1 %v801_v46 }
  0x65   :  { %800 = vmatpush3.bf16.msra.mxu0 %v797_v20  ;;  %804 = vmatpush3.bf16.msra.mxu1 %v801_v46 }
  0x66   :  { %806 = vmatprep.subr.bf16.mxu1 %v805_v50 }
  0x67   :  { %138 = vadd.xlane.f32.xlu1 %v137_v21  ;;  %156 = vadd.xlane.f32.xlu0 %v155_v22 }
  0x68   :  { %780 = vmatmul.mubr.msk.f32.vlgmr.msra.gmra.mrb[0].mxu0 %vm112_vm0, %v95_v29 }
  0x69   :  { %808 = vmatpush3.bf16.msra.mxu1 %v805_v50 }
  0x6b   :  { %141 = vadd.xlane.f32.xlu1 %v140_v25  ;;  %159 = vadd.xlane.f32.xlu0 %v158_v26 }
  0x6f   :  { %144 = vadd.xlane.f32.xlu1 %v143_v30  ;;  %162 = vadd.xlane.f32.xlu0 %v161_v31 }
  0x73   :  { %147 = vadd.xlane.f32.xlu1 %v146_v34  ;;  %165 = vadd.xlane.f32.xlu0 %v164_v35 }
  0x77   :  { %171 = vadd.xlane.f32.xlu1 %v170_v38  ;;  %168 = vadd.xlane.f32.xlu0 %v167_v39 }
  0x7b   :  { %114 = vadd.xlane.f32.xlu0 %v113_v42  ;;  %117 = vadd.xlane.f32.xlu1 %v116_v43 }
  0xe8   :  { %v133_v51 = vpop.xlane.xlu1 %132  ;;  %v127_v52 = vpop.xlane.xlu0 %126 }
  0xe9   :  { %vm175_vm1 = vcmp.ne.f32.partialorder %v133_v51, 0.0  ;;  %vm173_vm2 = vcmp.ne.f32.partialorder %v127_v52, 0.0 }
  0xea   :  { %v740_v54 = vsel %vm175_vm1, 1.0, %v969_v53  ;;  %v738_v55 = vsel %vm173_vm2, 1.0, %v969_v53  ;;  %vm563_vm2 = vcmask 1044484  }
  0xeb   :  { %v223_v56 = vmul.f32 %v740_v54, %v1095_v0  ;;  %v361_v57 = vrot.slane %v740_v54, 4  ;;  %v221_v58 = vmul.f32 %v738_v55, %v1097_v1  ;;  %v349_v59 = vrot.slane %v738_v55, 4 }
  0xec   :  { %v151_v60 = vpop.xlane.xlu1 %150  ;;  %v130_v61 = vpop.xlane.xlu0 %129 }
  0xed   :  { %v251_v62 = vsel %vm112_vm0, %v223_v56, 0.0  ;;  %v362_v63 = vadd.f32 %v740_v54, %v361_v57  ;;  %v237_v3 = vsel %vm112_vm0, %v221_v58, 0.0  ;;  %v350_v4 = vadd.f32 %v738_v55, %v349_v59 }
  0xee   :  { %v252_v6 = vrot.slane %v251_v62, 4  ;;  %v238_v7 = vrot.slane %v237_v3, 4  ;;  %vm181_vm3 = vcmp.ne.f32.partialorder %v151_v60, 0.0  ;;  %vm174_vm4 = vcmp.ne.f32.partialorder %v130_v61, 0.0 }
  0xef   :  { %v363_v10 = vrot.slane %v362_v63, 2  ;;  %v351_v11 = vrot.slane %v350_v4, 2  ;;  %v746_v0 = vsel %vm181_vm3, 1.0, %v969_v53  ;;  %v739_v12 = vsel %vm174_vm4, 1.0, %v969_v53 }
  0xf0   :  { %v253_v1 = vadd.f32 %v252_v6, %v251_v62  ;;  %v239_v13 = vadd.f32 %v238_v7, %v237_v3  ;;  %v229_v14 = vmul.f32 %v746_v0, %v1099_v2  ;;  %v397_v15 = vrot.slane %v746_v0, 4  ;;  %v136_v38 = vpop.xlane.xlu1 %135  ;;  %v154_v44 = vpop.xlane.xlu0 %153 }
  0xf1   :  { %v364_v16 = vadd.f32 %v363_v10, %v362_v63  ;;  %v352_v17 = vadd.f32 %v351_v11, %v350_v4  ;;  %v222_v20 = vmul.f32 %v739_v12, %v1105_v5  ;;  %v355_v21 = vrot.slane %v739_v12, 4 }
  0xf2   :  { %v254_v22 = vrot.slane %v253_v1, 2  ;;  %v240_v25 = vrot.slane %v239_v13, 2  ;;  %v293_v26 = vsel %vm112_vm0, %v229_v14, 0.0  ;;  %v398_v29 = vadd.f32 %v746_v0, %v397_v15 }
  0xf3   :  { %v365_v30 = vrot.slane %v364_v16, 1  ;;  %v353_v31 = vrot.slane %v352_v17, 1  ;;  %v294_v34 = vrot.slane %v293_v26, 4  ;;  %v244_v35 = vsel %vm112_vm0, %v222_v20, 0.0 }
  0xf4   :  { %v255_v39 = vadd.f32 %v254_v22, %v253_v1  ;;  %v241_v42 = vadd.f32 %v240_v25, %v239_v13  ;;  %v399_v2 = vrot.slane %v398_v29, 2  ;;  %v245_v43 = vrot.slane %v244_v35, 4  ;;  %v139_v60 = vpop.xlane.xlu1 %138  ;;  %v157_v1 = vpop.xlane.xlu0 %156 }
  0xf5   :  { %v295_v45 = vadd.f32 %v294_v34, %v293_v26  ;;  %v356_v46 = vadd.f32 %v739_v12, %v355_v21  ;;  %v1181_v5 = vadd.f32 %v365_v30, %v364_v16  ;;  %vm176_vm6 = vcmp.ne.f32.partialorder %v136_v38, 0.0 }
  0xf6   :  { %v400_v47 = vadd.f32 %v399_v2, %v398_v29  ;;  %v246_v48 = vadd.f32 %v245_v43, %v244_v35  ;;  %vm182_vm7 = vcmp.ne.f32.partialorder %v154_v44, 0.0  ;;  %v256_v51 = vrot.slane %v255_v39, 1 }
  0xf7   :  { %v296_v49 = vrot.slane %v295_v45, 2  ;;  %v357_v50 = vrot.slane %v356_v46, 2  ;;  %v242_v52 = vrot.slane %v241_v42, 1  ;;  %v354_v54 = vadd.f32 %v353_v31, %v352_v17 }
  0xf8   :  { %v247_v55 = vrot.slane %v246_v48, 2  ;;  %v741_v58 = vsel %vm176_vm6, 1.0, %v969_v53  ;;  %v747_v59 = vsel %vm182_vm7, 1.0, %v969_v53  ;;  %v401_v61 = vrot.slane %v400_v47, 1 }
  0xf9   :  { %v297_v56 = vadd.f32 %v296_v49, %v295_v45  ;;  %v358_v57 = vadd.f32 %v357_v50, %v356_v46  ;;  %v224_v63 = vmul.f32 %v741_v58, %v1111_v8  ;;  %v367_v3 = vrot.slane %v741_v58, 4 }
  0xfa   :  { %v248_v62 = vadd.f32 %v247_v55, %v246_v48  ;;  %v230_v7 = vmul.f32 %v747_v59, %v1113_v9  ;;  %v403_v10 = vrot.slane %v747_v59, 4  ;;  %vm177_vm9 = vcmp.ne.f32.partialorder %v139_v60, 0.0 }
  0xfb   :  { %v298_v4 = vrot.slane %v297_v56, 1  ;;  %v359_v6 = vrot.slane %v358_v57, 1  ;;  %v258_v0 = vsel %vm112_vm0, %v224_v63, 0.0  ;;  %v368_v12 = vadd.f32 %v741_v58, %v367_v3 }
  0xfc   :  { %v249_v11 = vrot.slane %v248_v62, 1  ;;  %v1188_v13 = vadd.f32 %v256_v51, %v255_v39  ;;  %v243_v14 = vadd.f32 %v242_v52, %v241_v42  ;;  %v259_v15 = vrot.slane %v258_v0, 4  ;;  %v142_v42 = vpop.xlane.xlu1 %141 }
  0xfd   :  { %v300_v16 = vsel %vm112_vm0, %v230_v7, 0.0  ;;  %v360_v8 = vadd.f32 %v359_v6, %v358_v57  ;;  %v369_v17 = vrot.slane %v368_v12, 2  ;;  %v404_v21 = vadd.f32 %v747_v59, %v403_v10  ;;  %v160_v10 = vpop.xlane.xlu0 %159 }
  0xfe   :  { %v301_v20 = vrot.slane %v300_v16, 4  ;;  %v402_v9 = vadd.f32 %v401_v61, %v400_v47  ;;  %v260_v22 = vadd.f32 %v259_v15, %v258_v0  ;;  %v742_v25 = vsel %vm177_vm9, 1.0, %v969_v53 }
  0xff   :  { %vm183_vm11 = vcmp.ne.f32.partialorder %v157_v1, 0.0  ;;  %v299_v26 = vadd.f32 %v298_v4, %v297_v56  ;;  %v250_v29 = vadd.f32 %v249_v11, %v248_v62  ;;  %v370_v30 = vadd.f32 %v369_v17, %v368_v12 }
 0x100   :  { %v302_v31 = vadd.f32 %v301_v20, %v300_v16  ;;  %v261_v34 = vrot.slane %v260_v22, 2  ;;  %v405_v35 = vrot.slane %v404_v21, 2  ;;  %v225_v38 = vmul.f32 %v742_v25, %v1119_v18 }
 0x101   :  { %v373_v39 = vrot.slane %v742_v25, 4  ;;  %v602_v2 = vsel %vm557_vm5, %v360_v8, %v354_v54  ;;  %v371_v43 = vrot.slane %v370_v30, 1  ;;  %v748_v45 = vsel %vm183_vm11, 1.0, %v969_v53  ;;  %v145_v8 = vpop.xlane.xlu1 %144 }
 0x102   :  { %v303_v44 = vrot.slane %v302_v31, 2  ;;  %v262_v46 = vadd.f32 %v261_v34, %v260_v22  ;;  %v406_v47 = vadd.f32 %v405_v35, %v404_v21  ;;  %v265_v48 = vsel %vm112_vm0, %v225_v38, 0.0 }
 0x103   :  { %v374_v49 = vadd.f32 %v742_v25, %v373_v39  ;;  %v266_v51 = vrot.slane %v265_v48, 4  ;;  %v231_v52 = vmul.f32 %v748_v45, %v1121_v19  ;;  %vm178_vm12 = vcmp.ne.f32.partialorder %v142_v42, 0.0 }
 0x104   :  { %v304_v50 = vadd.f32 %v303_v44, %v302_v31  ;;  %v372_v55 = vadd.f32 %v371_v43, %v370_v30  ;;  %v407_v18 = vrot.slane %v406_v47, 1  ;;  %v409_v57 = vrot.slane %v748_v45, 4 }
 0x105   :  { %v375_v56 = vrot.slane %v374_v49, 2  ;;  %v263_v58 = vrot.slane %v262_v46, 1  ;;  %v267_v59 = vadd.f32 %v266_v51, %v265_v48  ;;  %v307_v60 = vsel %vm112_vm0, %v231_v52, 0.0 }
 0x106   :  { %v305_v54 = vrot.slane %v304_v50, 1  ;;  %v1199_v61 = vsel %vm557_vm5, %v250_v29, %v243_v14  ;;  %v603_v62 = vsel %vm559_vm8, %v1181_v5, %v602_v2  ;;  %v408_v63 = vadd.f32 %v407_v18, %v406_v47 }
 0x107   :  { %v308_v3 = vrot.slane %v307_v60, 4  ;;  %v268_v4 = vrot.slane %v267_v59, 2  ;;  %v376_v19 = vadd.f32 %v375_v56, %v374_v49  ;;  %v410_v6 = vadd.f32 %v748_v45, %v409_v57  ;;  %v163_v45 = vpop.xlane.xlu0 %162 }
 0x108   :  { %v743_v7 = vsel %vm178_vm12, 1.0, %v969_v53  ;;  %v1206_v11 = vsel %vm561_vm10, %v372_v55, %v603_v62  ;;  %v306_v0 = vadd.f32 %v305_v54, %v304_v50  ;;  %v1209_v14 = vadd.f32 %v263_v58, %v262_v46 }
 0x109   :  { %v309_v12 = vadd.f32 %v308_v3, %v307_v60  ;;  %v226_v1 = vmul.f32 %v743_v7, %v1128_v23  ;;  %v269_v15 = vadd.f32 %v268_v4, %v267_v59  ;;  %v411_v5 = vrot.slane %v410_v6, 2 }
 0x10a   :  { %v379_v16 = vrot.slane %v743_v7, 4  ;;  %v609_v17 = vsel %vm557_vm5, %v408_v63, %v402_v9  ;;  %vm184_vm13 = vcmp.ne.f32.partialorder %v160_v10, 0.0  ;;  %v377_v22 = vrot.slane %v376_v19, 1 }
 0x10b   :  { %v310_v20 = vrot.slane %v309_v12, 2  ;;  %v272_v21 = vsel %vm112_vm0, %v226_v1, 0.0  ;;  %v412_v25 = vadd.f32 %v411_v5, %v410_v6  ;;  %v571_v31 = vsel %vm557_vm5, %v306_v0, %v299_v26 }
 0x10c   :  { %v273_v29 = vrot.slane %v272_v21, 4  ;;  %v380_v30 = vadd.f32 %v743_v7, %v379_v16  ;;  %v749_v23 = vsel %vm184_vm13, 1.0, %v969_v53  ;;  %vm179_vm14 = vcmp.ne.f32.partialorder %v145_v8, 0.0  ;;  %v166_v16 = vpop.xlane.xlu0 %165 }
 0x10d   :  { %v311_v34 = vadd.f32 %v310_v20, %v309_v12  ;;  %v270_v35 = vrot.slane %v269_v15, 1  ;;  %v413_v38 = vrot.slane %v412_v25, 1  ;;  %v232_v9 = vmul.f32 %v749_v23, %v1130_v24  ;;  %v148_v24 = vpop.xlane.xlu1 %147 }
 0x10e   :  { %v274_v39 = vadd.f32 %v273_v29, %v272_v21  ;;  %v381_v42 = vrot.slane %v380_v30, 2  ;;  %v415_v43 = vrot.slane %v749_v23, 4  ;;  %v744_v44 = vsel %vm179_vm14, 1.0, %v969_v53 }
 0x10f   :  { %v312_v2 = vrot.slane %v311_v34, 1  ;;  %v414_v46 = vadd.f32 %v413_v38, %v412_v25  ;;  %v227_v26 = vmul.f32 %v744_v44, %v1136_v27  ;;  %v1218_v49 = vadd.f32 %v377_v22, %v376_v19 }
 0x110   :  { %v275_v47 = vrot.slane %v274_v39, 2  ;;  %v382_v48 = vadd.f32 %v381_v42, %v380_v30  ;;  %v314_v50 = vsel %vm112_vm0, %v232_v9, 0.0  ;;  %v416_v51 = vadd.f32 %v749_v23, %v415_v43 }
 0x111   :  { %v385_v52 = vrot.slane %v744_v44, 4  ;;  %v1221_v55 = vadd.f32 %v270_v35, %v269_v15  ;;  %v315_v56 = vrot.slane %v314_v50, 4  ;;  %vm185_vm15 = vcmp.ne.f32.partialorder %v163_v45, 0.0  ;;  %v172_v38 = vpop.xlane.xlu1 %171 }
 0x112   :  { %v276_v18 = vadd.f32 %v275_v47, %v274_v39  ;;  %v313_v57 = vadd.f32 %v312_v2, %v311_v34  ;;  %v417_v58 = vrot.slane %v416_v51, 2  ;;  %v279_v54 = vsel %vm112_vm0, %v227_v26, 0.0  ;;  %v169_v47 = vpop.xlane.xlu0 %168 }
 0x113   :  { %v386_v59 = vadd.f32 %v744_v44, %v385_v52  ;;  %v610_v60 = vsel %vm559_vm8, %v414_v46, %v609_v17  ;;  %v383_v27 = vrot.slane %v382_v48, 1  ;;  %v316_v62 = vadd.f32 %v315_v56, %v314_v50 }
 0x114   :  { %v280_v63 = vrot.slane %v279_v54, 4  ;;  %v418_v3 = vadd.f32 %v417_v58, %v416_v51  ;;  %v750_v19 = vsel %vm185_vm15, 1.0, %v969_v53  ;;  %vm180_vm1 = vcmp.ne.f32.partialorder %v148_v24, 0.0 }
 0x115   :  { %v387_v4 = vrot.slane %v386_v59, 2  ;;  %v277_v6 = vrot.slane %v276_v18, 1  ;;  %v317_v7 = vrot.slane %v316_v62, 2  ;;  %v233_v0 = vmul.f32 %v750_v19, %v1138_v28 }
 0x116   :  { %v281_v10 = vadd.f32 %v280_v63, %v279_v54  ;;  %v419_v12 = vrot.slane %v418_v3, 1  ;;  %v421_v15 = vrot.slane %v750_v19, 4  ;;  %v745_v5 = vsel %vm180_vm1, 1.0, %v969_v53 }
 0x117   :  { %v388_v1 = vadd.f32 %v387_v4, %v386_v59  ;;  %v318_v8 = vadd.f32 %v317_v7, %v316_v62  ;;  %v321_v20 = vsel %vm112_vm0, %v233_v0, 0.0  ;;  %v228_v21 = vmul.f32 %v745_v5, %v1145_v32  ;;  %v115_v0 = vpop.xlane.xlu0 %114 }
 0x118   :  { %v282_v17 = vrot.slane %v281_v10, 2  ;;  %v1231_v22 = vsel %vm559_vm8, %v313_v57, %v571_v31  ;;  %v420_v25 = vadd.f32 %v419_v12, %v418_v3  ;;  %v322_v29 = vrot.slane %v321_v20, 4 }
 0x119   :  { %v422_v30 = vadd.f32 %v750_v19, %v421_v15  ;;  %v1233_v34 = vadd.f32 %v383_v27, %v382_v48  ;;  %v389_v28 = vrot.slane %v388_v1, 1  ;;  %v286_v23 = vsel %vm112_vm0, %v228_v21, 0.0 }
 0x11a   :  { %v391_v35 = vrot.slane %v745_v5, 4  ;;  %v1236_v39 = vadd.f32 %v277_v6, %v276_v18  ;;  %v319_v42 = vrot.slane %v318_v8, 1  ;;  %v323_v2 = vadd.f32 %v322_v29, %v321_v20 }
 0x11b   :  { %v423_v9 = vrot.slane %v422_v30, 2  ;;  %v1239_v32 = vsel %vm561_vm10, %v420_v25, %v610_v60  ;;  %v1241_v31 = vadd.f32 %v282_v17, %v281_v10  ;;  %v287_v43 = vrot.slane %v286_v23, 4 }
 0x11c   :  { %v392_v44 = vadd.f32 %v745_v5, %v391_v35  ;;  %v324_v45 = vrot.slane %v323_v2, 2  ;;  %vm186_vm3 = vcmp.ne.f32.partialorder %v166_v16, 0.0  ;;  %vm188_vm4 = vcmp.ne.f32.partialorder %v172_v38, 0.0 }
 0x11d   :  { %v424_v46 = vadd.f32 %v423_v9, %v422_v30  ;;  %v390_v48 = vadd.f32 %v389_v28, %v388_v1  ;;  %v288_v26 = vadd.f32 %v287_v43, %v286_v23  ;;  %v751_v51 = vsel %vm186_vm3, 1.0, %v969_v53 }
 0x11e   :  { %v393_v50 = vrot.slane %v392_v44, 2  ;;  %vm565_vm5 = vcmask 1045509   ;;  %v325_v52 = vadd.f32 %v324_v45, %v323_v2  ;;  %v234_v56 = vmul.f32 %v751_v51, %v1147_v33 }
 0x11f   :  { %v425_v18 = vrot.slane %v424_v46, 1  ;;  %v427_v24 = vrot.slane %v751_v51, 4  ;;  %vm567_vm6 = vcmask 1046534   ;;  %v320_v57 = vadd.f32 %v319_v42, %v318_v8 }
 0x120   :  { %v394_v58 = vadd.f32 %v393_v50, %v392_v44  ;;  %v753_v54 = vsel %vm188_vm4, 1.0, %v969_v53  ;;  %vm187_vm7 = vcmp.ne.f32.partialorder %v169_v47, 0.0  ;;  %vm569_vm9 = vcmask 1047559  }
 0x121   :  { %v284_v59 = vrot.slane %v1241_v31, 1  ;;  %v326_v60 = vrot.slane %v325_v52, 1  ;;  %v328_v27 = vsel %vm112_vm0, %v234_v56, 0.0  ;;  %v428_v62 = vadd.f32 %v751_v51, %v427_v24 }
 0x122   :  { %v289_v63 = vrot.slane %v288_v26, 2  ;;  %v395_v3 = vrot.slane %v394_v58, 1  ;;  %v329_v4 = vrot.slane %v328_v27, 4  ;;  %v236_v19 = vmul.f32 %v753_v54, %v1153_v36 }
 0x123   :  { %v426_v33 = vadd.f32 %v425_v18, %v424_v46  ;;  %v429_v6 = vrot.slane %v428_v62, 2  ;;  %v439_v7 = vrot.slane %v753_v54, 4  ;;  %v752_v10 = vsel %vm187_vm7, 1.0, %v969_v53 }
 0x124   :  { %v327_v12 = vadd.f32 %v326_v60, %v325_v52  ;;  %v330_v1 = vadd.f32 %v329_v4, %v328_v27  ;;  %v342_v15 = vsel %vm112_vm0, %v236_v19, 0.0  ;;  %v235_v5 = vmul.f32 %v752_v10, %v1155_v37 }
 0x125   :  { %v430_v16 = vadd.f32 %v429_v6, %v428_v62  ;;  %v343_v8 = vrot.slane %v342_v15, 4  ;;  %v440_v17 = vadd.f32 %v753_v54, %v439_v7  ;;  %v433_v20 = vrot.slane %v752_v10, 4 }
 0x126   :  { %v396_v21 = vadd.f32 %v395_v3, %v394_v58  ;;  %v331_v25 = vrot.slane %v330_v1, 2  ;;  %v335_v36 = vsel %vm112_vm0, %v235_v5, 0.0  ;;  %vm119_vm11 = vcmp.ne.f32.partialorder %v115_v0, 0.0 }
 0x127   :  { %v344_v29 = vadd.f32 %v343_v8, %v342_v15  ;;  %v441_v30 = vrot.slane %v440_v17, 2  ;;  %v336_v28 = vrot.slane %v335_v36, 4  ;;  %v605_v23 = vsel %vm563_vm2, %v1218_v49, %v1206_v11  ;;  %v118_v49 = vpop.xlane.xlu1 %117 }
 0x128   :  { %v332_v35 = vadd.f32 %v331_v25, %v330_v1  ;;  %v431_v38 = vrot.slane %v430_v16, 1  ;;  %v434_v42 = vadd.f32 %v752_v10, %v433_v20  ;;  %v736_v37 = vsel %vm119_vm11, 1.0, %v969_v53 }
 0x129   :  { %v345_v2 = vrot.slane %v344_v29, 2  ;;  %v442_v9 = vadd.f32 %v441_v30, %v440_v17  ;;  %v337_v43 = vadd.f32 %v336_v28, %v335_v36  ;;  %v606_v44 = vsel %vm565_vm5, %v1233_v34, %v605_v23 }
 0x12a   :  { %v333_v45 = vrot.slane %v332_v35, 1  ;;  %v435_v46 = vrot.slane %v434_v42, 2  ;;  %v607_v47 = vsel %vm567_vm6, %v390_v48, %v606_v44  ;;  %v537_v50 = vmul.f32 8.0, %v736_v37 }
 0x12b   :  { %v346_v51 = vadd.f32 %v345_v2, %v344_v29  ;;  %v443_v52 = vrot.slane %v442_v9, 1  ;;  %v338_v18 = vrot.slane %v337_v43, 2  ;;  %v608_v11 = vsel %vm569_vm9, %v396_v21, %v607_v47 }
 0x12c   :  { %v290_v56 = vadd.f32 %v289_v63, %v288_v26  ;;  %v334_v24 = vadd.f32 %v333_v45, %v332_v35  ;;  %v436_v58 = vadd.f32 %v435_v46, %v434_v42  ;;  %v618_v54 = vadd.f32 %v608_v11, %v537_v50 }
 0x12d   :  { %v573_v60 = vsel %vm561_vm10, %v320_v57, %v1231_v22  ;;  %v432_v27 = vadd.f32 %v431_v38, %v430_v16  ;;  %v347_v34 = vrot.slane %v346_v51, 1  ;;  %v339_v62 = vadd.f32 %v338_v18, %v337_v43 }
 0x12e   :  { %v444_v3 = vadd.f32 %v443_v52, %v442_v9  ;;  %v437_v4 = vrot.slane %v436_v58, 1  ;;  %v574_v48 = vsel %vm563_vm2, %v327_v12, %v573_v60  ;;  %vm120_vm12 = vcmp.ne.f32.partialorder %v118_v49, 0.0  ;;  %622 = vperm.xlu0 %819, %v618_v54  }
 0x12f   :  { %v340_v19 = vrot.slane %v339_v62, 1  ;;  %v575_v6 = vsel %vm565_vm5, %v334_v24, %v574_v48  ;;  %v612_v26 = vsel %vm563_vm2, %v426_v33, %v1239_v32  ;;  %v737_v63 = vsel %vm120_vm12, 1.0, %v969_v53 }
 0x130   :  { %v348_v7 = vadd.f32 %v347_v34, %v346_v51  ;;  %v438_v10 = vadd.f32 %v437_v4, %v436_v58  ;;  %v538_v22 = vmul.f32 8.0, %v737_v63  ;;  %v291_v57 = vrot.slane %v290_v56, 1 }
 0x131   :  { %v341_v0 = vadd.f32 %v340_v19, %v339_v62  ;;  %v613_v1 = vsel %vm565_vm5, %v432_v27, %v612_v26  ;;  %v285_v12 = vadd.f32 %v284_v59, %v1241_v31  ;;  %v560_v15 = vsel %vm559_vm8, %v1188_v13, %v1199_v61 }
 0x132   :  { %v614_v5 = vsel %vm567_vm6, %v438_v10, %v613_v1  ;;  %v540_v32 = vmul.f32 %v538_v22, %v1163_v41  ;;  %v292_v53 = vadd.f32 %v291_v57, %v290_v56  ;;  %v562_v33 = vsel %vm561_vm10, %v1209_v14, %v560_v15 }
 0x133   :  { %v576_v16 = vsel %vm567_vm6, %v341_v0, %v575_v6  ;;  %v615_v8 = vsel %vm569_vm9, %v444_v3, %v614_v5  ;;  %v539_v17 = vmul.f32 %v537_v50, %v1161_v40  ;;  %v564_v31 = vsel %vm563_vm2, %v1221_v55, %v562_v33  ;;  %v754_v55 = vld [vmem:[%s1316_s5] ss:$0 sm:$0xff]  ;;  %s931_s5 = scalar_lea.vmem %s723_s24, 256 }
 0x134   :  { %v577_v59 = vsel %vm569_vm9, %v348_v7, %v576_v16  ;;  %v619_v13 = vadd.f32 %v615_v8, %v538_v22  ;;  %v566_v61 = vsel %vm565_vm5, %v1236_v39, %v564_v31  ;;  %p932_p12 = scmp.ne.s32.totalorder %s723_s24, %s931_s5  ;;  %p937_p0 = scmp.lt.s32.totalorder %s931_s5, %s931_s5 }
 0x135   :  { %v568_v41 = vsel %vm567_vm6, %v285_v12, %v566_v61  ;;  %v581_v20 = vadd.f32 %v577_v59, %v540_v32 }
 0x136   :  { %v570_v14 = vsel %vm569_vm9, %v292_v53, %v568_v41  ;;  %627 = vperm.xlu1 %820, %v619_v13   ;;  %p938_p1 = por %p937_p0, %p936_p13 }
 0x137   :  { %v580_v21 = vadd.f32 %v570_v14, %v539_v17 }
 0x138   :  { %p939_p2 = pnand %p938_p1, %p932_p12 }
 0x139   :  { %790 = vmatprep.mubr.msk.f32.mxu1 %vm112_vm0, %v580_v21 }
 0x13a   :  { %791 = vmatmul.mubr.msk.f32.vlgmr.msra.gmra.mrb[0].mxu1 %vm112_vm0, %v581_v20 }
 0x13b   :  { %v781_v40 = vpop.f32.mrb[0].mxu0 }
 0x13c   :  { %v528_v25 = vpop.f32.mrb[1].mxu0  ;;  %v534_v36 = vadd.f32 %v781_v40, %v754_v55 }
 0x13d   :  { %v529_v29 = vadd.f32 %v754_v55, %v528_v25 }
 0x1ad   :  { %v623_v30 = vpop.permute.xlu0 %622 }
 0x1ae   :  { %v630_v23 = vmul.f32 %v623_v30, %v529_v29 }
 0x1b5   :  { %v628_v39 = vpop.permute.xlu1 %627 }
 0x1b6   :  { %v631_v28 = vmul.f32 %v628_v39, %v534_v36 }
 0x20d   :  { %v792_v35 = vpop.f32.mrb[0].mxu1 }
 0x20e   :  { %v710_v38 = vadd.f32 %v792_v35, %v631_v28  ;;  %v704_v42 = vpop.f32.mrb[1].mxu1 }
 0x20f   :  { %v705_v37 = vadd.f32 %v704_v42, %v630_v23 }
 0x210   :  { %v714_v2 = vmul.f32 0.5, %v710_v38 }
 0x211   :  { %v713_v9 = vmul.f32 0.5, %v705_v37 }
 0x212   :  { %716 = vst.msk [vmem:[#allocation11 + $0x8] sm:$0xff] %vm112_vm0, %v714_v2 }
 0x213   :  { %715 = vst.msk [vmem:[#allocation11] sm:$0xff] %vm112_vm0, %v713_v9 }
 0x214   :  { %942 = shalt.err (!%p939_p2)
}
 0x215   :  { %s943_s14 = scalar_lea.hbm %s1317_s6, 256 }
 0x216   :  { %p944_p3 = scmp.ne.s32.totalorder %s1317_s6, %s943_s14  ;;  %p947_p4 = scmp.lt.u32.totalorder %s943_s14, %s1317_s6 }
 0x218   :  { %p949_p5 = pnand %p947_p4, %p944_p3 }
 0x21a   :  { %952 = shalt.err (!%p949_p5)
}
 0x21b   :  { %728 = dma.vmem_to_hbm [thread:$0]  %s723_s24, 256, %s1317_s6, [#allocation4], %s963_s9, %s963_s9, %s964_s10  }
 0x21c   :  { %959 = dma.done.wait [#allocation4], 256  }
 0x21d   :  { %960 = vsyncadd [#allocation4], 4294967040 }
 0x21e   :  { %732 = vsyncpa [#allocation3], 1 }
 0x21f   :  { %733 = vsyncpa [#allocation6], 1 }
 0x220   :  { %734 = vsyncpa [#allocation9], 1 }
 0x221   :  { %735 = vsyncpa [#allocation4], 1 }

</bundles_post_ra>
